<compile_context>
chip_gen: v7x
topology: tpu7x:2x2x1
jax: 0.10.0
libtpu: 0.0.40
codegen_flags: <defaults>
</compile_context>

<pallas_src>
import functools

import jax
import jax.numpy as jnp
import numpy as np
from jax.experimental import pallas as pl
from jax.experimental.pallas import tpu as pltpu


def _focal_loss_kernel(x_ref, t_ref, loss_ref, *, gamma, eps):
    """One row-tile: per-row focal loss for the target class only."""
    x = x_ref[...].astype(jnp.float32)            # (TN, C)  class axis -> lanes
    t = t_ref[...]                                # (TN, 1)  int32 (-1 => padded row)
    tn, c = x.shape

    # Stable softmax pieces along the class (lane) axis.
    m = jnp.max(x, axis=-1, keepdims=True)        # (TN, 1)
    e = jnp.exp(x - m)                            # (TN, C)  only per-element EUP op
    s = jnp.sum(e, axis=-1, keepdims=True)        # (TN, 1)

    # Select the target column via iota comparison (one-hot never materialized
    # as extra transcendental work): non-target contributions are exactly zero.
    cols = jax.lax.broadcasted_iota(jnp.int32, (tn, c), 1)
    e_t = jnp.sum(jnp.where(cols == t, e, 0.0), axis=-1, keepdims=True)  # (TN, 1)

    p_t = jnp.clip(e_t / s, eps, 1.0 - eps)       # clamp(eps, 1-eps) of softmax prob

    loss_row = -jnp.log(p_t)                      # (TN, 1): TN logs, not TN*C

    # gamma specialization (gamma is a Python float -> this `if` is trace-time).
    if gamma != 0.0:
        omp = 1.0 - p_t
        g_int = int(gamma)
        if float(g_int) == gamma and 0 < g_int <= 4:
            focal = omp
            for _ in range(g_int - 1):
                focal = focal * omp               # VPU multiplies, no pow()
        else:
            focal = omp ** gamma
        loss_row = loss_row * focal

    # Padded rows carry target == -1 and must contribute exactly zero.
    loss_row = jnp.where(t >= 0, loss_row, 0.0)

    loss_ref[...] = loss_row                      # (TN, 1) per-row losses


def _round_up(v, m):
    return -(-v // m) * m


def _pick_tile_n(n, c, max_tile_n=1024):
    """Largest row tile that is a multiple of 8 and keeps the double-buffered
    input stream comfortably within scoped VMEM on every TPU generation."""
    vmem_budget_bytes = 8 * 1024 * 1024           # budget for x (2 buffers)
    rows_by_vmem = max(8, vmem_budget_bytes // (2 * c * 4))
    tile = min(max_tile_n, rows_by_vmem, _round_up(n, 8))
    return max(8, (tile // 8) * 8)


def focal_loss_with_one_hot(inputs, target, gamma=0.0, eps=1e-07, max_tile_n=1024):
    """JAX/Pallas equivalent of FocalLossWithOneHot(gamma, eps)(input, target)."""
    n, c = inputs.shape
    tile_n = _pick_tile_n(n, c, max_tile_n)
    num_blocks = -(-n // tile_n)
    n_pad = num_blocks * tile_n

    x = inputs.astype(jnp.float32)
    t2d = target.reshape(n, 1).astype(jnp.int32)
    if n_pad != n:
        x = jnp.pad(x, ((0, n_pad - n), (0, 0)))
        t2d = jnp.pad(t2d, ((0, n_pad - n), (0, 0)), constant_values=-1)

    kernel = functools.partial(_focal_loss_kernel, gamma=float(gamma), eps=float(eps))

    row_losses = pl.pallas_call(
        kernel,
        out_shape=jax.ShapeDtypeStruct((n_pad, 1), jnp.float32),
        grid_spec=pltpu.PrefetchScalarGridSpec(
            num_scalar_prefetch=0,
            grid=(num_blocks,),
            in_specs=[
                pl.BlockSpec((tile_n, c), lambda i: (i, 0)),
                pl.BlockSpec((tile_n, 1), lambda i: (i, 0)),
            ],
            out_specs=pl.BlockSpec((tile_n, 1), lambda i: (i, 0)),
        ),
        compiler_params=pltpu.CompilerParams(
            dimension_semantics=("parallel",),
            vmem_limit_bytes=32 * 1024 * 1024,
        ),
    )(x, t2d)

    # mean over all N*C entries (non-target entries of the reference are exactly 0).
    return jnp.sum(row_losses) / jnp.float32(n * c)


def _reference(inputs, target, gamma, eps):
    """Pure-JAX reference reproducing the PyTorch forward."""
    n, c = inputs.shape
    y = jax.nn.one_hot(target, c, dtype=jnp.float32)
    p = jax.nn.softmax(inputs.astype(jnp.float32), axis=-1)
    p = jnp.clip(p, eps, 1.0 - eps)
    loss = -y * jnp.log(p)
    loss = loss * (1.0 - p) ** gamma
    return jnp.mean(loss)


if __name__ == "__main__":
    key = jax.random.PRNGKey(0)
    kx, kt = jax.random.split(key)

    N, C = 16, 128
    x = jax.random.normal(kx, (N, C), dtype=jnp.float32)
    target = jax.random.randint(kt, (N,), 0, C, dtype=jnp.int32)

    for gamma in (0.0, 2.0):  # module default gamma=0; also exercise the focal term
        out = focal_loss_with_one_hot(x, target, gamma=gamma, eps=1e-07)
        out = jax.block_until_ready(out)
        ref = _reference(x, target, gamma, 1e-07)
        np.testing.assert_allclose(np.asarray(out), np.asarray(ref),
                                   rtol=1e-5, atol=1e-6)

    print("KERNEL_OK")
</pallas_src>

<mosaic_0001>
module attributes {stable_mosaic.version = 11 : i64} {
  func.func @_focal_loss_kernel(%arg0: i32, %arg1: memref<16x128xf32, #tpu.memory_space<vmem>>, %arg2: memref<16x1xi32, #tpu.memory_space<vmem>>, %arg3: memref<16x1xf32, #tpu.memory_space<vmem>>) attributes {dimension_semantics = [#tpu.dimension_semantics<parallel>], iteration_bounds = array<i64: 1>, scalar_prefetch = 0 : i64, scratch_operands = 0 : i64, tpu.core_type = #tpu.core_type<tc>, window_params = [{transform_indices = @transform_0, window_bounds = array<i64: 16, 128>}, {transform_indices = @transform_1, window_bounds = array<i64: 16, 1>}, {transform_indices = @transform_2, window_bounds = array<i64: 16, 1>}]} {
    %c0 = arith.constant 0 : index
    %c0_0 = arith.constant 0 : index
    %0 = vector.load %arg1[%c0, %c0_0] : memref<16x128xf32, #tpu.memory_space<vmem>>, vector<16x128xf32>
    %c0_1 = arith.constant 0 : index
    %c0_2 = arith.constant 0 : index
    %1 = vector.load %arg2[%c0_1, %c0_2] : memref<16x1xi32, #tpu.memory_space<vmem>>, vector<16x1xi32>
    %cst = arith.constant dense<0xFF800000> : vector<16xf32>
    %2 = vector.multi_reduction <maximumf>, %0, %cst [1] : vector<16x128xf32> to vector<16xf32>
    %3 = vector.shape_cast %2 : vector<16xf32> to vector<16x1xf32>
    %4 = vector.broadcast %3 : vector<16x1xf32> to vector<16x128xf32>
    %5 = arith.subf %0, %4 : vector<16x128xf32>
    %6 = math.exp %5 : vector<16x128xf32>
    %cst_3 = arith.constant dense<0.000000e+00> : vector<16xf32>
    %7 = vector.multi_reduction <add>, %6, %cst_3 [1] : vector<16x128xf32> to vector<16xf32>
    %8 = vector.shape_cast %7 : vector<16xf32> to vector<16x1xf32>
    %9 = tpu.iota {dimensions = array<i32: 1>} : vector<16x128xi32>
    %10 = vector.broadcast %1 : vector<16x1xi32> to vector<16x128xi32>
    %11 = arith.cmpi eq, %9, %10 : vector<16x128xi32>
    %cst_4 = arith.constant 0.000000e+00 : f32
    %12 = vector.broadcast %cst_4 : f32 to vector<16x128xf32>
    %13 = arith.select %11, %6, %12 : vector<16x128xi1>, vector<16x128xf32>
    %cst_5 = arith.constant dense<0.000000e+00> : vector<16xf32>
    %14 = vector.multi_reduction <add>, %13, %cst_5 [1] : vector<16x128xf32> to vector<16xf32>
    %15 = vector.shape_cast %14 : vector<16xf32> to vector<16x1xf32>
    %16 = arith.divf %15, %8 : vector<16x1xf32>
    %cst_6 = arith.constant 1.000000e-07 : f32
    %cst_7 = arith.constant 0.99999988 : f32
    %17 = vector.broadcast %cst_6 : f32 to vector<16x1xf32>
    %18 = arith.maximumf %17, %16 : vector<16x1xf32>
    %19 = vector.broadcast %cst_7 : f32 to vector<16x1xf32>
    %20 = arith.minimumf %19, %18 : vector<16x1xf32>
    %21 = math.log %20 : vector<16x1xf32>
    %cst_8 = arith.constant 0.000000e+00 : f32
    %22 = vector.broadcast %cst_8 : f32 to vector<16x1xf32>
    %23 = arith.subf %22, %21 : vector<16x1xf32>
    %c0_i32 = arith.constant 0 : i32
    %24 = vector.broadcast %c0_i32 : i32 to vector<16x1xi32>
    %25 = arith.cmpi sge, %1, %24 : vector<16x1xi32>
    %cst_9 = arith.constant 0.000000e+00 : f32
    %26 = vector.broadcast %cst_9 : f32 to vector<16x1xf32>
    %27 = arith.select %25, %23, %26 : vector<16x1xi1>, vector<16x1xf32>
    %c0_10 = arith.constant 0 : index
    %c0_11 = arith.constant 0 : index
    %28 = vector.load %arg3[%c0_10, %c0_11] : memref<16x1xf32, #tpu.memory_space<vmem>>, vector<16x1xf32>
    tpu.vector_store %arg3[%c0_10, %c0_11], %27 {strides = array<i32>} : memref<16x1xf32, #tpu.memory_space<vmem>>, vector<16x1xf32>,
    return
  }
  func.func @transform_0(%arg0: i32) -> (i32, i32) {
    %c0_i32 = arith.constant 0 : i32
    %c0_i32_0 = arith.constant 0 : i32
    return %arg0, %c0_i32 : i32, i32
  }
  func.func @transform_1(%arg0: i32) -> (i32, i32) {
    %c0_i32 = arith.constant 0 : i32
    %c0_i32_0 = arith.constant 0 : i32
    return %arg0, %c0_i32 : i32, i32
  }
  func.func @transform_2(%arg0: i32) -> (i32, i32) {
    %c0_i32 = arith.constant 0 : i32
    %c0_i32_0 = arith.constant 0 : i32
    return %arg0, %c0_i32 : i32, i32
  }
}

</mosaic_0001>

<bundles_post_ra>
// kernel: tpu_custom_call.1
= control target key start
LH: loop header
LB: loop body
LE: loop exit
PB: predicated region body
PF: predicated region fallthrough
CT: control target
= control target key end

     0   :  { %v85_v1 = vmov 0   ;;  %v29_v11 = vlaneseq  ;;  %vm63_vm3 = vcmask 7168   ;;  %s119_s0 = inlined_call_operand.vmem [shape: f32[16,128], index: 0, kind: input, shape index: {}]   ;;  %s120_s1 = inlined_call_operand.vmem [shape: s32[16,1], index: 1, kind: input, shape index: {}]   ;;  %s121_s2 = inlined_call_operand.vmem [shape: f32[16,1], index: 2, kind: output, shape index: {}]  }
   0x1   :  { %v11_v0 = vld [vmem:[%s119_s0] sm:$0xff]  ;;  %71 = vset.pattern.permute.xlu1 %v85_v1  ;;  %72 = vset.pattern.permute.xlu0 %v85_v1  ;;  %v12_v3 = vld [vmem:[%s119_s0 + $0x8] sm:$0xff] }
   0x2   :  { %v13_v2 = vld [vmem:[%s120_s1] sm:$0xff]  ;;  %15 = vmax.xlane.f32.xlu0 %v11_v0  ;;  %v14_v4 = vld [vmem:[%s120_s1 + $0x8] sm:$0xff]  ;;  %v30_v13 = vand.u32 127, %v29_v11 }
   0x3   :  { %32 = vperm.xlu1 %71, %v13_v2   ;;  %vm59_vm2 = vcmp.ge.s32.totalorder %v13_v2, 0  ;;  %vm60_vm4 = vcmp.ge.s32.totalorder %v14_v4, 0 }
   0x6   :  { %17 = vmax.xlane.f32.xlu0 %v12_v3 }
   0x7   :  { %35 = vperm.xlu1 %71, %v14_v4  }
  0x82   :  { %v33_v12 = vpop.permute.xlu1 %32 }
  0x83   :  { %vm37_vm0 = vcmp.eq.s32.totalorder %v30_v13, %v33_v12 }
  0x86   :  { %v36_v15 = vpop.permute.xlu1 %35 }
  0x87   :  { %vm38_vm1 = vcmp.eq.s32.totalorder %v30_v13, %v36_v15 }
  0x8f   :  { %v16_v5 = vpop.xlane.xlu0 %15 }
  0x90   :  { %v19_v6 = vsub.f32 %v11_v0, %v16_v5 }
  0x92   :  { %v21_v7 = vmul.f32 1.442695, %v19_v6 }
  0x93   :  { %v18_v8 = vpop.xlane.xlu0 %17 }
  0x94   :  { %73 = vpow2.f32 %v21_v7  ;;  %v20_v9 = vsub.f32 %v12_v3, %v18_v8 }
  0x96   :  { %v23_v10 = vmul.f32 1.442695, %v20_v9 }
  0x98   :  { %75 = vpow2.f32 %v23_v10 }
  0x9e   :  { %v74_v14 = vpop.eup %73 }
  0x9f   :  { %25 = vadd.xlane.f32.xlu0 %v74_v14  ;;  %v39_v17 = vsel %vm37_vm0, %v74_v14, 0.0 }
  0xa2   :  { %v76_v16 = vpop.eup %75 }
  0xa3   :  { %41 = vadd.xlane.f32.xlu0 %v39_v17  ;;  %27 = vadd.xlane.f32.xlu1 %v76_v16  ;;  %v40_v18 = vsel %vm38_vm1, %v76_v16, 0.0 }
  0xa7   :  { %43 = vadd.xlane.f32.xlu0 %v40_v18 }
 0x12c   :  { %v26_v19 = vpop.xlane.xlu0 %25 }
 0x12d   :  { %77 = vrcp.f32 %v26_v19 }
 0x130   :  { %v28_v20 = vpop.xlane.xlu1 %27  ;;  %v42_v21 = vpop.xlane.xlu0 %41 }
 0x131   :  { %79 = vrcp.f32 %v28_v20 }
 0x134   :  { %v44_v26 = vpop.xlane.xlu0 %43 }
 0x137   :  { %v78_v22 = vpop.eup %77 }
 0x138   :  { %v46_v23 = vmul.f32 %v78_v22, %v42_v21 }
 0x13a   :  { %v49_v24 = vmax.f32 %v46_v23, 1e-07 }
 0x13b   :  { %v80_v25 = vpop.eup %79 }
 0x13c   :  { %v51_v27 = vmin.f32 %v49_v24, 0.9999999  ;;  %v48_v28 = vmul.f32 %v80_v25, %v44_v26 }
 0x13e   :  { %81 = vlog2.f32 %v51_v27  ;;  %v50_v29 = vmax.f32 %v48_v28, 1e-07 }
 0x140   :  { %v52_v30 = vmin.f32 %v50_v29, 0.9999999 }
 0x142   :  { %83 = vlog2.f32 %v52_v30 }
 0x148   :  { %v82_v31 = vpop.eup %81 }
 0x149   :  { %v54_v32 = vmul.f32 0.6931472, %v82_v31 }
 0x14b   :  { %v57_v33 = vsub.f32 0.0, %v54_v32 }
 0x14c   :  { %v84_v34 = vpop.eup %83 }
 0x14d   :  { %v61_v35 = vsel %vm59_vm2, %v57_v33, 0.0  ;;  %v56_v36 = vmul.f32 0.6931472, %v84_v34 }
 0x14e   :  { %64 = vst.msk [vmem:[%s121_s2] sm:$0xff] %vm63_vm3, %v61_v35 }
 0x14f   :  { %v58_v37 = vsub.f32 0.0, %v56_v36 }
 0x151   :  { %v62_v38 = vsel %vm60_vm4, %v58_v37, 0.0 }
 0x152   :  { %65 = vst.msk [vmem:[%s121_s2 + $0x8] sm:$0xff] %vm63_vm3, %v62_v38 }

</bundles_post_ra>
